<compile_context>
chip_gen: v7x
topology: tpu7x:2x2x1
jax: 0.10.0
libtpu: 0.0.40
codegen_flags: <defaults>
</compile_context>

<pallas_src>
import functools

import jax
import jax.numpy as jnp
import numpy as np
from jax.experimental import pallas as pl
from jax.experimental.pallas import tpu as pltpu


def _round_up(v, m):
    return ((v + m - 1) // m) * m


def _histogram_kernel(sedge_ref, x_ref, o_ref, acc_ref, *, half_sigma, nedges, nbins):
    # sedge_ref : SMEM (nedges,)   pre-scaled edges (0.5*sigma*e_j)
    # x_ref     : VMEM (tb, tn)    sample tile
    # o_ref     : VMEM (tb, LANES) normalized histogram (lanes >= nbins are 0)
    # acc_ref   : VMEM (tb, LANES) scratch: bin lane k accumulates T_k - T_{k+1}
    nj = pl.program_id(1)

    @pl.when(nj == 0)
    def _init():
        acc_ref[...] = jnp.zeros_like(acc_ref)

    sx = half_sigma * x_ref[...]                                      # (tb, tn), hoisted mul

    # Streaming edge loop: one tanh slice at a time (1 EUP push / element), reduced
    # to a (tb,1) column (XLU) and differenced on the fly into the bin lanes.
    # Static loop -> fully visible to the LLO scheduler (nedges is small).
    prev = jnp.sum(jnp.tanh(sx - sedge_ref[0]), axis=-1, keepdims=True)
    for j in range(1, nedges):
        curr = jnp.sum(jnp.tanh(sx - sedge_ref[j]), axis=-1, keepdims=True)
        acc_ref[:, j - 1:j] += prev - curr                            # bin k = j - 1
        prev = curr

    @pl.when(nj == pl.num_programs(1) - 1)
    def _finalize():
        lane = jax.lax.broadcasted_iota(jnp.int32, acc_ref.shape, 1)
        eps = jnp.where(lane < nbins, jnp.float32(1e-6), jnp.float32(0.0))
        h = 0.5 * acc_ref[...] + eps                                  # padded lanes stay exactly 0
        denom = jnp.sum(h, axis=-1, keepdims=True)                    # == sum over the real bins
        o_ref[...] = h * pl.reciprocal(denom)                         # exact recip, full-lane store


def adaptive_soft_histogram(x, bin_edges, sigma=500.0, *, max_tb=512,
                            vmem_budget_bytes=None):
    """x: (B, N) float32. Returns (B, NBINS) normalized soft histogram."""
    bin_edges = np.asarray(bin_edges, dtype=np.float32)
    nbins = int(bin_edges.shape[0]) - 1
    nedges = nbins + 1
    half_sigma = 0.5 * float(sigma)
    lanes = _round_up(max(nbins, 1), 128)                 # lane-dense output / scratch width

    x = jnp.asarray(x, dtype=jnp.float32)
    B, N = x.shape

    # ---- batch tile: multiple of 8; keep >= 2 grid steps so both v7x TCs get work.
    b8 = _round_up(B, 8)
    tb = min(max_tb, b8)
    if b8 >= 16:
        tb = min(tb, _round_up(pl.cdiv(b8, 2), 8))
    bp = _round_up(b8, tb)

    # ---- sample tile: multiple of 128, sized from a VMEM budget so the double-
    # buffered x tile + output + scratch fit under v5e's 16 MiB scoped default
    # and v7x's smaller VMEM, without relying on vmem_limit_bytes.
    if vmem_budget_bytes is None:
        try:
            cap = pltpu.get_tpu_info().vmem_capacity_bytes
        except Exception:
            cap = 64 * 1024 * 1024
        vmem_budget_bytes = min(cap // 4, 12 * 1024 * 1024)
    fixed = 3 * tb * lanes * 4                                        # output (x2 bufs) + scratch
    tn_budget = max(128, ((vmem_budget_bytes - fixed) // (2 * tb * 4)) // 128 * 128)
    tn = min(tn_budget, _round_up(N, 128))
    np_pad = _round_up(N, tn)

    # Sample padding value: tanh(half_sigma*(pad - e_j)) saturates to exactly -1
    # for every edge, so padded samples contribute exactly 0 to every bin.
    pad_val = float(bin_edges.min()) - 40.0 / max(half_sigma, 1e-30)
    if bp != B or np_pad != N:
        x = jnp.pad(x, ((0, bp - B), (0, np_pad - N)), constant_values=pad_val)

    sedge = jnp.asarray(half_sigma * bin_edges, dtype=jnp.float32)    # (nedges,)

    kernel = functools.partial(_histogram_kernel, half_sigma=half_sigma,
                               nedges=nedges, nbins=nbins)

    cost = pl.CostEstimate(
        flops=int(3 * bp * np_pad * nedges),
        transcendentals=int(bp * np_pad * nedges),                    # exactly one tanh / (sample, edge)
        bytes_accessed=int(4 * (bp * np_pad + bp * lanes + nedges)),
    )

    out = pl.pallas_call(
        kernel,
        out_shape=jax.ShapeDtypeStruct((bp, lanes), jnp.float32),
        grid_spec=pltpu.PrefetchScalarGridSpec(
            num_scalar_prefetch=0,
            grid=(bp // tb, np_pad // tn),                            # reduction (N) axis last
            in_specs=[
                pl.BlockSpec(memory_space=pltpu.MemorySpace.SMEM),    # scaled edges (resident)
                pl.BlockSpec((tb, tn), lambda i, j: (i, j)),          # x tile
            ],
            out_specs=pl.BlockSpec((tb, lanes), lambda i, j: (i, 0)), # resident across N axis
            scratch_shapes=[pltpu.VMEM((tb, lanes), jnp.float32)],
        ),
        compiler_params=pltpu.CompilerParams(
            dimension_semantics=("parallel", "arbitrary")),
        cost_estimate=cost,
    )(sedge, x)

    return out[:B, :nbins]


def _reference(x, bin_edges, sigma=500.0):
    """Pure-JAX port of the PyTorch forward, for verification."""
    bin_edges = jnp.asarray(bin_edges, dtype=jnp.float32)
    t1, t2 = bin_edges[:-1], bin_edges[1:]
    widths = t2 - t1
    centers = t1 + 0.5 * widths                      # (NBINS,)
    delta = (widths / 2.0)[:, None]                  # (NBINS, 1)
    xd = x[:, None, :] - centers[None, :, None]      # (B, NBINS, N)
    h = jax.nn.sigmoid(sigma * (xd + delta)) - jax.nn.sigmoid(sigma * (xd - delta))
    h = h.sum(axis=-1) + 1e-6
    return h / h.sum(axis=-1, keepdims=True)


if __name__ == "__main__":
    B, N, NBINS = 16, 256, 16
    sigma = 500.0
    bin_edges = np.linspace(0.0, 1.0, NBINS + 1).astype(np.float32)

    key = jax.random.PRNGKey(0)
    x = jax.random.uniform(key, (B, N), dtype=jnp.float32)

    out = adaptive_soft_histogram(x, bin_edges, sigma)
    out = jax.block_until_ready(out)

    ref = _reference(x, bin_edges, sigma)
    np.testing.assert_allclose(np.asarray(out), np.asarray(ref),
                               rtol=1e-4, atol=1e-5)
    assert out.shape == (B, NBINS)
    print("KERNEL_OK")
</pallas_src>

<mosaic_0001>
module attributes {stable_mosaic.version = 11 : i64} {
  func.func @_histogram_kernel(%arg0: i32, %arg1: i32, %arg2: memref<17xf32, #tpu.memory_space<smem>>, %arg3: memref<8x256xf32, #tpu.memory_space<vmem>>, %arg4: memref<8x128xf32, #tpu.memory_space<vmem>>, %arg5: memref<8x128xf32, #tpu.memory_space<vmem>>) attributes {dimension_semantics = [#tpu.dimension_semantics<parallel>, #tpu.dimension_semantics<arbitrary>], iteration_bounds = array<i64: 2, 1>, scalar_prefetch = 0 : i64, scratch_operands = 1 : i64, tpu.core_type = #tpu.core_type<tc>, window_params = [{transform_indices = @transform_0, window_bounds = array<i64: 17>}, {transform_indices = @transform_1, window_bounds = array<i64: 8, 256>}, {transform_indices = @transform_2, window_bounds = array<i64: 8, 128>}]} {
    %c0_i32 = arith.constant 0 : i32
    %0 = arith.cmpi eq, %arg1, %c0_i32 : i32
    %1 = arith.extui %0 : i1 to i32
    %c0_i32_0 = arith.constant 0 : i32
    %2 = arith.cmpi ne, %1, %c0_i32_0 : i32
    scf.if %2 {
      %cst_86 = arith.constant 0.000000e+00 : f32
      %175 = vector.broadcast %cst_86 : f32 to vector<8x128xf32>
      %c0_87 = arith.constant 0 : index
      %c0_88 = arith.constant 0 : index
      %176 = vector.load %arg5[%c0_87, %c0_88] : memref<8x128xf32, #tpu.memory_space<vmem>>, vector<8x128xf32>
      tpu.vector_store %arg5[%c0_87, %c0_88], %175 {strides = array<i32>} : memref<8x128xf32, #tpu.memory_space<vmem>>, vector<8x128xf32>,
    } else {
    }
    %c0 = arith.constant 0 : index
    %c0_1 = arith.constant 0 : index
    %3 = vector.load %arg3[%c0, %c0_1] : memref<8x256xf32, #tpu.memory_space<vmem>>, vector<8x256xf32>
    %cst = arith.constant 2.500000e+02 : f32
    %4 = vector.broadcast %cst : f32 to vector<8x256xf32>
    %5 = arith.mulf %4, %3 : vector<8x256xf32>
    %c0_2 = arith.constant 0 : index
    %6 = memref.load %arg2[%c0_2] : memref<17xf32, #tpu.memory_space<smem>>
    %7 = vector.broadcast %6 : f32 to vector<8x256xf32>
    %8 = arith.subf %5, %7 : vector<8x256xf32>
    %9 = math.tanh %8 : vector<8x256xf32>
    %cst_3 = arith.constant dense<0.000000e+00> : vector<8xf32>
    %10 = vector.multi_reduction <add>, %9, %cst_3 [1] : vector<8x256xf32> to vector<8xf32>
    %11 = vector.shape_cast %10 : vector<8xf32> to vector<8x1xf32>
    %c1 = arith.constant 1 : index
    %12 = memref.load %arg2[%c1] : memref<17xf32, #tpu.memory_space<smem>>
    %13 = vector.broadcast %12 : f32 to vector<8x256xf32>
    %14 = arith.subf %5, %13 : vector<8x256xf32>
    %15 = math.tanh %14 : vector<8x256xf32>
    %cst_4 = arith.constant dense<0.000000e+00> : vector<8xf32>
    %16 = vector.multi_reduction <add>, %15, %cst_4 [1] : vector<8x256xf32> to vector<8xf32>
    %17 = vector.shape_cast %16 : vector<8xf32> to vector<8x1xf32>
    %c0_5 = arith.constant 0 : index
    %c0_6 = arith.constant 0 : index
    %18 = vector.load %arg5[%c0_5, %c0_6] : memref<8x128xf32, #tpu.memory_space<vmem>>, vector<8x1xf32>
    %19 = arith.subf %11, %17 : vector<8x1xf32>
    %20 = arith.addf %18, %19 : vector<8x1xf32>
    %c0_7 = arith.constant 0 : index
    %c0_8 = arith.constant 0 : index
    %21 = vector.load %arg5[%c0_7, %c0_8] : memref<8x128xf32, #tpu.memory_space<vmem>>, vector<8x1xf32>
    tpu.vector_store %arg5[%c0_7, %c0_8], %20 {strides = array<i32>} : memref<8x128xf32, #tpu.memory_space<vmem>>, vector<8x1xf32>,
    %c2 = arith.constant 2 : index
    %22 = memref.load %arg2[%c2] : memref<17xf32, #tpu.memory_space<smem>>
    %23 = vector.broadcast %22 : f32 to vector<8x256xf32>
    %24 = arith.subf %5, %23 : vector<8x256xf32>
    %25 = math.tanh %24 : vector<8x256xf32>
    %cst_9 = arith.constant dense<0.000000e+00> : vector<8xf32>
    %26 = vector.multi_reduction <add>, %25, %cst_9 [1] : vector<8x256xf32> to vector<8xf32>
    %27 = vector.shape_cast %26 : vector<8xf32> to vector<8x1xf32>
    %c0_10 = arith.constant 0 : index
    %c1_11 = arith.constant 1 : index
    %28 = vector.load %arg5[%c0_10, %c1_11] : memref<8x128xf32, #tpu.memory_space<vmem>>, vector<8x1xf32>
    %29 = arith.subf %17, %27 : vector<8x1xf32>
    %30 = arith.addf %28, %29 : vector<8x1xf32>
    %c0_12 = arith.constant 0 : index
    %c1_13 = arith.constant 1 : index
    %31 = vector.load %arg5[%c0_12, %c1_13] : memref<8x128xf32, #tpu.memory_space<vmem>>, vector<8x1xf32>
    tpu.vector_store %arg5[%c0_12, %c1_13], %30 {strides = array<i32>} : memref<8x128xf32, #tpu.memory_space<vmem>>, vector<8x1xf32>,
    %c3 = arith.constant 3 : index
    %32 = memref.load %arg2[%c3] : memref<17xf32, #tpu.memory_space<smem>>
    %33 = vector.broadcast %32 : f32 to vector<8x256xf32>
    %34 = arith.subf %5, %33 : vector<8x256xf32>
    %35 = math.tanh %34 : vector<8x256xf32>
    %cst_14 = arith.constant dense<0.000000e+00> : vector<8xf32>
    %36 = vector.multi_reduction <add>, %35, %cst_14 [1] : vector<8x256xf32> to vector<8xf32>
    %37 = vector.shape_cast %36 : vector<8xf32> to vector<8x1xf32>
    %c0_15 = arith.constant 0 : index
    %c2_16 = arith.constant 2 : index
    %38 = vector.load %arg5[%c0_15, %c2_16] : memref<8x128xf32, #tpu.memory_space<vmem>>, vector<8x1xf32>
    %39 = arith.subf %27, %37 : vector<8x1xf32>
    %40 = arith.addf %38, %39 : vector<8x1xf32>
    %c0_17 = arith.constant 0 : index
    %c2_18 = arith.constant 2 : index
    %41 = vector.load %arg5[%c0_17, %c2_18] : memref<8x128xf32, #tpu.memory_space<vmem>>, vector<8x1xf32>
    tpu.vector_store %arg5[%c0_17, %c2_18], %40 {strides = array<i32>} : memref<8x128xf32, #tpu.memory_space<vmem>>, vector<8x1xf32>,
    %c4 = arith.constant 4 : index
    %42 = memref.load %arg2[%c4] : memref<17xf32, #tpu.memory_space<smem>>
    %43 = vector.broadcast %42 : f32 to vector<8x256xf32>
    %44 = arith.subf %5, %43 : vector<8x256xf32>
    %45 = math.tanh %44 : vector<8x256xf32>
    %cst_19 = arith.constant dense<0.000000e+00> : vector<8xf32>
    %46 = vector.multi_reduction <add>, %45, %cst_19 [1] : vector<8x256xf32> to vector<8xf32>
    %47 = vector.shape_cast %46 : vector<8xf32> to vector<8x1xf32>
    %c0_20 = arith.constant 0 : index
    %c3_21 = arith.constant 3 : index
    %48 = vector.load %arg5[%c0_20, %c3_21] : memref<8x128xf32, #tpu.memory_space<vmem>>, vector<8x1xf32>
    %49 = arith.subf %37, %47 : vector<8x1xf32>
    %50 = arith.addf %48, %49 : vector<8x1xf32>
    %c0_22 = arith.constant 0 : index
    %c3_23 = arith.constant 3 : index
    %51 = vector.load %arg5[%c0_22, %c3_23] : memref<8x128xf32, #tpu.memory_space<vmem>>, vector<8x1xf32>
    tpu.vector_store %arg5[%c0_22, %c3_23], %50 {strides = array<i32>} : memref<8x128xf32, #tpu.memory_space<vmem>>, vector<8x1xf32>,
    %c5 = arith.constant 5 : index
    %52 = memref.load %arg2[%c5] : memref<17xf32, #tpu.memory_space<smem>>
    %53 = vector.broadcast %52 : f32 to vector<8x256xf32>
    %54 = arith.subf %5, %53 : vector<8x256xf32>
    %55 = math.tanh %54 : vector<8x256xf32>
    %cst_24 = arith.constant dense<0.000000e+00> : vector<8xf32>
    %56 = vector.multi_reduction <add>, %55, %cst_24 [1] : vector<8x256xf32> to vector<8xf32>
    %57 = vector.shape_cast %56 : vector<8xf32> to vector<8x1xf32>
    %c0_25 = arith.constant 0 : index
    %c4_26 = arith.constant 4 : index
    %58 = vector.load %arg5[%c0_25, %c4_26] : memref<8x128xf32, #tpu.memory_space<vmem>>, vector<8x1xf32>
    %59 = arith.subf %47, %57 : vector<8x1xf32>
    %60 = arith.addf %58, %59 : vector<8x1xf32>
    %c0_27 = arith.constant 0 : index
    %c4_28 = arith.constant 4 : index
    %61 = vector.load %arg5[%c0_27, %c4_28] : memref<8x128xf32, #tpu.memory_space<vmem>>, vector<8x1xf32>
    tpu.vector_store %arg5[%c0_27, %c4_28], %60 {strides = array<i32>} : memref<8x128xf32, #tpu.memory_space<vmem>>, vector<8x1xf32>,
    %c6 = arith.constant 6 : index
    %62 = memref.load %arg2[%c6] : memref<17xf32, #tpu.memory_space<smem>>
    %63 = vector.broadcast %62 : f32 to vector<8x256xf32>
    %64 = arith.subf %5, %63 : vector<8x256xf32>
    %65 = math.tanh %64 : vector<8x256xf32>
    %cst_29 = arith.constant dense<0.000000e+00> : vector<8xf32>
    %66 = vector.multi_reduction <add>, %65, %cst_29 [1] : vector<8x256xf32> to vector<8xf32>
    %67 = vector.shape_cast %66 : vector<8xf32> to vector<8x1xf32>
    %c0_30 = arith.constant 0 : index
    %c5_31 = arith.constant 5 : index
    %68 = vector.load %arg5[%c0_30, %c5_31] : memref<8x128xf32, #tpu.memory_space<vmem>>, vector<8x1xf32>
    %69 = arith.subf %57, %67 : vector<8x1xf32>
    %70 = arith.addf %68, %69 : vector<8x1xf32>
    %c0_32 = arith.constant 0 : index
    %c5_33 = arith.constant 5 : index
    %71 = vector.load %arg5[%c0_32, %c5_33] : memref<8x128xf32, #tpu.memory_space<vmem>>, vector<8x1xf32>
    tpu.vector_store %arg5[%c0_32, %c5_33], %70 {strides = array<i32>} : memref<8x128xf32, #tpu.memory_space<vmem>>, vector<8x1xf32>,
    %c7 = arith.constant 7 : index
    %72 = memref.load %arg2[%c7] : memref<17xf32, #tpu.memory_space<smem>>
    %73 = vector.broadcast %72 : f32 to vector<8x256xf32>
    %74 = arith.subf %5, %73 : vector<8x256xf32>
    %75 = math.tanh %74 : vector<8x256xf32>
    %cst_34 = arith.constant dense<0.000000e+00> : vector<8xf32>
    %76 = vector.multi_reduction <add>, %75, %cst_34 [1] : vector<8x256xf32> to vector<8xf32>
    %77 = vector.shape_cast %76 : vector<8xf32> to vector<8x1xf32>
    %c0_35 = arith.constant 0 : index
    %c6_36 = arith.constant 6 : index
    %78 = vector.load %arg5[%c0_35, %c6_36] : memref<8x128xf32, #tpu.memory_space<vmem>>, vector<8x1xf32>
    %79 = arith.subf %67, %77 : vector<8x1xf32>
    %80 = arith.addf %78, %79 : vector<8x1xf32>
    %c0_37 = arith.constant 0 : index
    %c6_38 = arith.constant 6 : index
    %81 = vector.load %arg5[%c0_37, %c6_38] : memref<8x128xf32, #tpu.memory_space<vmem>>, vector<8x1xf32>
    tpu.vector_store %arg5[%c0_37, %c6_38], %80 {strides = array<i32>} : memref<8x128xf32, #tpu.memory_space<vmem>>, vector<8x1xf32>,
    %c8 = arith.constant 8 : index
    %82 = memref.load %arg2[%c8] : memref<17xf32, #tpu.memory_space<smem>>
    %83 = vector.broadcast %82 : f32 to vector<8x256xf32>
    %84 = arith.subf %5, %83 : vector<8x256xf32>
    %85 = math.tanh %84 : vector<8x256xf32>
    %cst_39 = arith.constant dense<0.000000e+00> : vector<8xf32>
    %86 = vector.multi_reduction <add>, %85, %cst_39 [1] : vector<8x256xf32> to vector<8xf32>
    %87 = vector.shape_cast %86 : vector<8xf32> to vector<8x1xf32>
    %c0_40 = arith.constant 0 : index
    %c7_41 = arith.constant 7 : index
    %88 = vector.load %arg5[%c0_40, %c7_41] : memref<8x128xf32, #tpu.memory_space<vmem>>, vector<8x1xf32>
    %89 = arith.subf %77, %87 : vector<8x1xf32>
    %90 = arith.addf %88, %89 : vector<8x1xf32>
    %c0_42 = arith.constant 0 : index
    %c7_43 = arith.constant 7 : index
    %91 = vector.load %arg5[%c0_42, %c7_43] : memref<8x128xf32, #tpu.memory_space<vmem>>, vector<8x1xf32>
    tpu.vector_store %arg5[%c0_42, %c7_43], %90 {strides = array<i32>} : memref<8x128xf32, #tpu.memory_space<vmem>>, vector<8x1xf32>,
    %c9 = arith.constant 9 : index
    %92 = memref.load %arg2[%c9] : memref<17xf32, #tpu.memory_space<smem>>
    %93 = vector.broadcast %92 : f32 to vector<8x256xf32>
    %94 = arith.subf %5, %93 : vector<8x256xf32>
    %95 = math.tanh %94 : vector<8x256xf32>
    %cst_44 = arith.constant dense<0.000000e+00> : vector<8xf32>
    %96 = vector.multi_reduction <add>, %95, %cst_44 [1] : vector<8x256xf32> to vector<8xf32>
    %97 = vector.shape_cast %96 : vector<8xf32> to vector<8x1xf32>
    %c0_45 = arith.constant 0 : index
    %c8_46 = arith.constant 8 : index
    %98 = vector.load %arg5[%c0_45, %c8_46] : memref<8x128xf32, #tpu.memory_space<vmem>>, vector<8x1xf32>
    %99 = arith.subf %87, %97 : vector<8x1xf32>
    %100 = arith.addf %98, %99 : vector<8x1xf32>
    %c0_47 = arith.constant 0 : index
    %c8_48 = arith.constant 8 : index
    %101 = vector.load %arg5[%c0_47, %c8_48] : memref<8x128xf32, #tpu.memory_space<vmem>>, vector<8x1xf32>
    tpu.vector_store %arg5[%c0_47, %c8_48], %100 {strides = array<i32>} : memref<8x128xf32, #tpu.memory_space<vmem>>, vector<8x1xf32>,
    %c10 = arith.constant 10 : index
    %102 = memref.load %arg2[%c10] : memref<17xf32, #tpu.memory_space<smem>>
    %103 = vector.broadcast %102 : f32 to vector<8x256xf32>
    %104 = arith.subf %5, %103 : vector<8x256xf32>
    %105 = math.tanh %104 : vector<8x256xf32>
    %cst_49 = arith.constant dense<0.000000e+00> : vector<8xf32>
    %106 = vector.multi_reduction <add>, %105, %cst_49 [1] : vector<8x256xf32> to vector<8xf32>
    %107 = vector.shape_cast %106 : vector<8xf32> to vector<8x1xf32>
    %c0_50 = arith.constant 0 : index
    %c9_51 = arith.constant 9 : index
    %108 = vector.load %arg5[%c0_50, %c9_51] : memref<8x128xf32, #tpu.memory_space<vmem>>, vector<8x1xf32>
    %109 = arith.subf %97, %107 : vector<8x1xf32>
    %110 = arith.addf %108, %109 : vector<8x1xf32>
    %c0_52 = arith.constant 0 : index
    %c9_53 = arith.constant 9 : index
    %111 = vector.load %arg5[%c0_52, %c9_53] : memref<8x128xf32, #tpu.memory_space<vmem>>, vector<8x1xf32>
    tpu.vector_store %arg5[%c0_52, %c9_53], %110 {strides = array<i32>} : memref<8x128xf32, #tpu.memory_space<vmem>>, vector<8x1xf32>,
    %c11 = arith.constant 11 : index
    %112 = memref.load %arg2[%c11] : memref<17xf32, #tpu.memory_space<smem>>
    %113 = vector.broadcast %112 : f32 to vector<8x256xf32>
    %114 = arith.subf %5, %113 : vector<8x256xf32>
    %115 = math.tanh %114 : vector<8x256xf32>
    %cst_54 = arith.constant dense<0.000000e+00> : vector<8xf32>
    %116 = vector.multi_reduction <add>, %115, %cst_54 [1] : vector<8x256xf32> to vector<8xf32>
    %117 = vector.shape_cast %116 : vector<8xf32> to vector<8x1xf32>
    %c0_55 = arith.constant 0 : index
    %c10_56 = arith.constant 10 : index
    %118 = vector.load %arg5[%c0_55, %c10_56] : memref<8x128xf32, #tpu.memory_space<vmem>>, vector<8x1xf32>
    %119 = arith.subf %107, %117 : vector<8x1xf32>
    %120 = arith.addf %118, %119 : vector<8x1xf32>
    %c0_57 = arith.constant 0 : index
    %c10_58 = arith.constant 10 : index
    %121 = vector.load %arg5[%c0_57, %c10_58] : memref<8x128xf32, #tpu.memory_space<vmem>>, vector<8x1xf32>
    tpu.vector_store %arg5[%c0_57, %c10_58], %120 {strides = array<i32>} : memref<8x128xf32, #tpu.memory_space<vmem>>, vector<8x1xf32>,
    %c12 = arith.constant 12 : index
    %122 = memref.load %arg2[%c12] : memref<17xf32, #tpu.memory_space<smem>>
    %123 = vector.broadcast %122 : f32 to vector<8x256xf32>
    %124 = arith.subf %5, %123 : vector<8x256xf32>
    %125 = math.tanh %124 : vector<8x256xf32>
    %cst_59 = arith.constant dense<0.000000e+00> : vector<8xf32>
    %126 = vector.multi_reduction <add>, %125, %cst_59 [1] : vector<8x256xf32> to vector<8xf32>
    %127 = vector.shape_cast %126 : vector<8xf32> to vector<8x1xf32>
    %c0_60 = arith.constant 0 : index
    %c11_61 = arith.constant 11 : index
    %128 = vector.load %arg5[%c0_60, %c11_61] : memref<8x128xf32, #tpu.memory_space<vmem>>, vector<8x1xf32>
    %129 = arith.subf %117, %127 : vector<8x1xf32>
    %130 = arith.addf %128, %129 : vector<8x1xf32>
    %c0_62 = arith.constant 0 : index
    %c11_63 = arith.constant 11 : index
    %131 = vector.load %arg5[%c0_62, %c11_63] : memref<8x128xf32, #tpu.memory_space<vmem>>, vector<8x1xf32>
    tpu.vector_store %arg5[%c0_62, %c11_63], %130 {strides = array<i32>} : memref<8x128xf32, #tpu.memory_space<vmem>>, vector<8x1xf32>,
    %c13 = arith.constant 13 : index
    %132 = memref.load %arg2[%c13] : memref<17xf32, #tpu.memory_space<smem>>
    %133 = vector.broadcast %132 : f32 to vector<8x256xf32>
    %134 = arith.subf %5, %133 : vector<8x256xf32>
    %135 = math.tanh %134 : vector<8x256xf32>
    %cst_64 = arith.constant dense<0.000000e+00> : vector<8xf32>
    %136 = vector.multi_reduction <add>, %135, %cst_64 [1] : vector<8x256xf32> to vector<8xf32>
    %137 = vector.shape_cast %136 : vector<8xf32> to vector<8x1xf32>
    %c0_65 = arith.constant 0 : index
    %c12_66 = arith.constant 12 : index
    %138 = vector.load %arg5[%c0_65, %c12_66] : memref<8x128xf32, #tpu.memory_space<vmem>>, vector<8x1xf32>
    %139 = arith.subf %127, %137 : vector<8x1xf32>
    %140 = arith.addf %138, %139 : vector<8x1xf32>
    %c0_67 = arith.constant 0 : index
    %c12_68 = arith.constant 12 : index
    %141 = vector.load %arg5[%c0_67, %c12_68] : memref<8x128xf32, #tpu.memory_space<vmem>>, vector<8x1xf32>
    tpu.vector_store %arg5[%c0_67, %c12_68], %140 {strides = array<i32>} : memref<8x128xf32, #tpu.memory_space<vmem>>, vector<8x1xf32>,
    %c14 = arith.constant 14 : index
    %142 = memref.load %arg2[%c14] : memref<17xf32, #tpu.memory_space<smem>>
    %143 = vector.broadcast %142 : f32 to vector<8x256xf32>
    %144 = arith.subf %5, %143 : vector<8x256xf32>
    %145 = math.tanh %144 : vector<8x256xf32>
    %cst_69 = arith.constant dense<0.000000e+00> : vector<8xf32>
    %146 = vector.multi_reduction <add>, %145, %cst_69 [1] : vector<8x256xf32> to vector<8xf32>
    %147 = vector.shape_cast %146 : vector<8xf32> to vector<8x1xf32>
    %c0_70 = arith.constant 0 : index
    %c13_71 = arith.constant 13 : index
    %148 = vector.load %arg5[%c0_70, %c13_71] : memref<8x128xf32, #tpu.memory_space<vmem>>, vector<8x1xf32>
    %149 = arith.subf %137, %147 : vector<8x1xf32>
    %150 = arith.addf %148, %149 : vector<8x1xf32>
    %c0_72 = arith.constant 0 : index
    %c13_73 = arith.constant 13 : index
    %151 = vector.load %arg5[%c0_72, %c13_73] : memref<8x128xf32, #tpu.memory_space<vmem>>, vector<8x1xf32>
    tpu.vector_store %arg5[%c0_72, %c13_73], %150 {strides = array<i32>} : memref<8x128xf32, #tpu.memory_space<vmem>>, vector<8x1xf32>,
    %c15 = arith.constant 15 : index
    %152 = memref.load %arg2[%c15] : memref<17xf32, #tpu.memory_space<smem>>
    %153 = vector.broadcast %152 : f32 to vector<8x256xf32>
    %154 = arith.subf %5, %153 : vector<8x256xf32>
    %155 = math.tanh %154 : vector<8x256xf32>
    %cst_74 = arith.constant dense<0.000000e+00> : vector<8xf32>
    %156 = vector.multi_reduction <add>, %155, %cst_74 [1] : vector<8x256xf32> to vector<8xf32>
    %157 = vector.shape_cast %156 : vector<8xf32> to vector<8x1xf32>
    %c0_75 = arith.constant 0 : index
    %c14_76 = arith.constant 14 : index
    %158 = vector.load %arg5[%c0_75, %c14_76] : memref<8x128xf32, #tpu.memory_space<vmem>>, vector<8x1xf32>
    %159 = arith.subf %147, %157 : vector<8x1xf32>
    %160 = arith.addf %158, %159 : vector<8x1xf32>
    %c0_77 = arith.constant 0 : index
    %c14_78 = arith.constant 14 : index
    %161 = vector.load %arg5[%c0_77, %c14_78] : memref<8x128xf32, #tpu.memory_space<vmem>>, vector<8x1xf32>
    tpu.vector_store %arg5[%c0_77, %c14_78], %160 {strides = array<i32>} : memref<8x128xf32, #tpu.memory_space<vmem>>, vector<8x1xf32>,
    %c16 = arith.constant 16 : index
    %162 = memref.load %arg2[%c16] : memref<17xf32, #tpu.memory_space<smem>>
    %163 = vector.broadcast %162 : f32 to vector<8x256xf32>
    %164 = arith.subf %5, %163 : vector<8x256xf32>
    %165 = math.tanh %164 : vector<8x256xf32>
    %cst_79 = arith.constant dense<0.000000e+00> : vector<8xf32>
    %166 = vector.multi_reduction <add>, %165, %cst_79 [1] : vector<8x256xf32> to vector<8xf32>
    %167 = vector.shape_cast %166 : vector<8xf32> to vector<8x1xf32>
    %c0_80 = arith.constant 0 : index
    %c15_81 = arith.constant 15 : index
    %168 = vector.load %arg5[%c0_80, %c15_81] : memref<8x128xf32, #tpu.memory_space<vmem>>, vector<8x1xf32>
    %169 = arith.subf %157, %167 : vector<8x1xf32>
    %170 = arith.addf %168, %169 : vector<8x1xf32>
    %c0_82 = arith.constant 0 : index
    %c15_83 = arith.constant 15 : index
    %171 = vector.load %arg5[%c0_82, %c15_83] : memref<8x128xf32, #tpu.memory_space<vmem>>, vector<8x1xf32>
    tpu.vector_store %arg5[%c0_82, %c15_83], %170 {strides = array<i32>} : memref<8x128xf32, #tpu.memory_space<vmem>>, vector<8x1xf32>,
    %c0_i32_84 = arith.constant 0 : i32
    %172 = arith.cmpi eq, %arg1, %c0_i32_84 : i32
    %173 = arith.extui %172 : i1 to i32
    %c0_i32_85 = arith.constant 0 : i32
    %174 = arith.cmpi ne, %173, %c0_i32_85 : i32
    scf.if %174 {
      %175 = tpu.iota {dimensions = array<i32: 1>} : vector<8x128xi32>
      %c16_i32 = arith.constant 16 : i32
      %176 = vector.broadcast %c16_i32 : i32 to vector<8x128xi32>
      %177 = arith.cmpi slt, %175, %176 : vector<8x128xi32>
      %cst_86 = arith.constant 9.99999997E-7 : f32
      %cst_87 = arith.constant 0.000000e+00 : f32
      %178 = vector.broadcast %cst_86 : f32 to vector<8x128xf32>
      %179 = vector.broadcast %cst_87 : f32 to vector<8x128xf32>
      %180 = arith.select %177, %178, %179 : vector<8x128xi1>, vector<8x128xf32>
      %c0_88 = arith.constant 0 : index
      %c0_89 = arith.constant 0 : index
      %181 = vector.load %arg5[%c0_88, %c0_89] : memref<8x128xf32, #tpu.memory_space<vmem>>, vector<8x128xf32>
      %cst_90 = arith.constant 5.000000e-01 : f32
      %182 = vector.broadcast %cst_90 : f32 to vector<8x128xf32>
      %183 = arith.mulf %182, %181 : vector<8x128xf32>
      %184 = arith.addf %183, %180 : vector<8x128xf32>
      %cst_91 = arith.constant dense<0.000000e+00> : vector<8xf32>
      %185 = vector.multi_reduction <add>, %184, %cst_91 [1] : vector<8x128xf32> to vector<8xf32>
      %186 = vector.shape_cast %185 : vector<8xf32> to vector<8x1xf32>
      %187 = tpu.reciprocal %186 : vector<8x1xf32> -> vector<8x1xf32>
      %188 = vector.broadcast %187 : vector<8x1xf32> to vector<8x128xf32>
      %189 = arith.mulf %184, %188 : vector<8x128xf32>
      %c0_92 = arith.constant 0 : index
      %c0_93 = arith.constant 0 : index
      %190 = vector.load %arg4[%c0_92, %c0_93] : memref<8x128xf32, #tpu.memory_space<vmem>>, vector<8x128xf32>
      tpu.vector_store %arg4[%c0_92, %c0_93], %189 {strides = array<i32>} : memref<8x128xf32, #tpu.memory_space<vmem>>, vector<8x128xf32>,
    } else {
    }
    return
  }
  func.func @transform_0(%arg0: i32, %arg1: i32) -> i32 {
    %c0_i32 = arith.constant 0 : i32
    %c0_i32_0 = arith.constant 0 : i32
    return %c0_i32 : i32
  }
  func.func @transform_1(%arg0: i32, %arg1: i32) -> (i32, i32) {
    %c0_i32 = arith.constant 0 : i32
    return %arg0, %arg1 : i32, i32
  }
  func.func @transform_2(%arg0: i32, %arg1: i32) -> (i32, i32) {
    %c0_i32 = arith.constant 0 : i32
    %c0_i32_0 = arith.constant 0 : i32
    return %arg0, %c0_i32 : i32, i32
  }
}

</mosaic_0001>

<bundles_post_ra>
// kernel: tpu_custom_call.1
= control target key start
LH: loop header
LB: loop body
LE: loop exit
PB: predicated region body
PF: predicated region fallthrough
CT: control target
= control target key end

     0   :  { %7 = vsyncpa [#allocation6], 0  ;;  %s1183_s0 = inlined_call_operand.hbm [shape: f32[17], index: 0, kind: input, shape index: {}]   ;;  %s1184_s1 = inlined_call_operand.hbm [shape: f32[16,256], index: 1, kind: input, shape index: {}]   ;;  %s1185_s2 = inlined_call_operand.hbm [shape: f32[16,128], index: 2, kind: output, shape index: {}]  }
   0x1   :  { %8 = vsyncpa [#allocation4], 0 }
   0x2   :  { %10 = vsyncpa [#allocation4 + $0x1], 0 }
   0x3   :  { %11 = vsyncpa [#allocation5], 0 }
   0x4   :  { %13 = vsyncpa [#allocation5 + $0x1], 0  ;;  %s880_s9 = smov 0   ;;  %s882_s10 = smov 0  }
   0x5   :  { %s884_s11 = smov 0   ;;  %s886_s12 = smov 0  }
   0x6   :  { %s888_s13 = smov 0   ;;  %s890_s14 = smov 0  }
   0x7 LB: > { %s553_s15 = sadd.s32 4294967295, %s859_s14   ;;  %s554_s16 = sadd.s32 4294967294, %s859_s14   ;;  %s859_s14 = sphi %s890_s14, %s19_s14   ;;  %s855_s13 = sphi %s888_s13, %s1209_s13   ;;  %s851_s12 = sphi %s886_s12, %s1208_s12   ;;  %s847_s11 = sphi %s884_s11, %s1207_s11   ;;  %s843_s10 = sphi %s882_s10, %s1206_s10   ;;  %s839_s9 = sphi %s880_s9, %s1205_s9  }
   0x8   : > { %p74_p0 = scmp.ne.s32.totalorder %s843_s10, %s839_s9  ;;  %p914_p1 = scmp.eq.s32.totalorder %s553_s15, 0 }
   0x9   : > { %p918_p2 = scmp.eq.s32.totalorder %s553_s15, 1  ;;  %p104_p3 = scmp.eq.s32.totalorder %s554_s16, 1 }
   0xa   : > { %s1190_s17 = scalar_select %p914_p1, 1, 0 }
   0xb   : > { %p924_p4 = por %p914_p1, %p74_p0  ;;  %p555_p5 = scmp.ge.s32.totalorder %s859_s14, 1 }
   0xc   : > { %p929_p6 = por %p104_p3, %p74_p0  ;;  %p111_p7 = scmp.lt.s32.totalorder %s859_s14, 3 }
   0xd   : > { %s1192_s19 = scalar_select %p924_p4, 1, 0 }
   0xe   : > { %s1193_s20 = scalar_select %p929_p6, 1, 0 }
   0xf   : > { %p934_p8 = pnand %p555_p5, %p111_p7  ;;  %s31_s22 = sadd.s32 1, %s855_s13 }
  0x10   : > { %p948_p12 = scmp.ge.s32.totalorder %s31_s22, 2  ;;  %s61_s25 = sadd.s32 1, %s847_s11 }
  0x11   : > { %p594_p10 = pneg %p934_p8  ;;  %p68_p13 = scmp.ne.s32.totalorder %s847_s11, %s843_s10 }
  0x12   : > { %p69_p0 = scmp.eq.s32.totalorder %s859_s14, 0  ;;  %s730_s28 = scalar_lea.hbm %s1183_s0, 16 }
  0x13   : > { %p944_p11 = pnand %p594_p10, %p914_p1  ;;  %p731_p3 = scmp.ne.s32.totalorder %s1183_s0, %s730_s28 }
  0x14   : > { %p737_p9 = scmp.lt.u32.totalorder %s730_s28, %s1183_s0 }
  0x15   : > { %p732_p5 = pneg %p944_p11 }
  0x17   : > { %p733_p7 = pnand %p732_p5, %p731_p3 }
  0x19   : > { %p734_p10 = pneg %p733_p7 }
  0x1b   : > { %p739_p6 = pnand %p737_p9, %p734_p10 }
  0x1d   : > { %742 = shalt.err (!%p739_p6)
}
  0x1e   : > { %s861_s5 = smov [#allocation3]   ;;  %s1211_s22 = smov (%p948_p12, %s31_s22), 0 }
  0x1f   : > { %597 = dma.hbm_to_smem (!%p944_p11), %s1183_s0, 16, %s861_s5, [#allocation6]  }
  0x20   : > { %p979_p6 = por %p69_p0, %p68_p13  ;;  %p988_p9 = por %p918_p2, %p68_p13 }
  0x21   : > { %s56_s16 = ssub.s32 %s855_s13, %s1211_s22  ;;  %p607_p3 = scmp.lt.s32.totalorder %s859_s14, 2 }
  0x22   : > { %s1198_s15 = scalar_select %p988_p9, 1, 0 }
  0x23   : > { %p59_p5 = scmp.eq.s32.totalorder %s56_s16, 0  ;;  %s133_s23 = sand.u32 1, %s847_s11  }
  0x24   : > { %s558_s24 = sshll.u32 %s133_s23, 4  ;;  %s585_s27 = sshll.u32 %s855_s13, 8 }
  0x25   : > { %s997_s26 = scalar_select %p59_p5, %s847_s11, %s61_s25  }
  0x26   : > { %s1003_s30 = scalar_lea.hbm %s1184_s1, %s585_s27  ;;  %s137_s18 = scalar_lea.vmem [#allocation7], %s558_s24 }
  0x27   : > { %s147_s3 = sshll.u32 %s137_s18, 4  ;;  %p1009_p2 = pnand %p607_p3, %p979_p6  ;;  %s1005_s3 = int_to_ptr.vmem [resolvable:$true] %s147_s3 }
  0x28   : > { %s134_s25 = scalar_lea.sflag [#allocation4], %s133_s23  ;;  %s743_s5 = scalar_lea.hbm %s1003_s30, 256 }
  0x29   : > { %p744_p11 = scmp.ne.s32.totalorder %s1003_s30, %s743_s5  ;;  %p745_p12 = pneg %p1009_p2 }
  0x2a   : > { %s748_s16 = scalar_lea.hbm %s1184_s1, 512  ;;  %p749_p7 = scmp.lt.u32.totalorder %s1003_s30, %s1184_s1 }
  0x2b   : > { %p746_p13 = pnand %p745_p12, %p744_p11  ;;  %p750_p10 = scmp.lt.u32.totalorder %s748_s16, %s743_s5 }
  0x2c   : > { %p752_p3 = scmp.lt.u32.totalorder %s743_s5, %s1003_s30 }
  0x2d   : > { %p747_p0 = pneg %p746_p13  ;;  %p751_p6 = por %p750_p10, %p749_p7 }
  0x2f   : > { %p753_p5 = por %p752_p3, %p751_p6 }
  0x31   : > { %p754_p9 = pnand %p753_p5, %p747_p0 }
  0x33   : > { %757 = shalt.err (!%p754_p9)
}
  0x34   : > { %s758_s23 = scalar_lea.vmem %s1005_s3, 256  ;;  %s862_s27 = smov [#allocation7]  }
  0x35   : > { %p759_p11 = scmp.ne.s32.totalorder %s1005_s3, %s758_s23  ;;  %s763_s28 = sshll.u32 %s862_s27, 4  ;;  %s764_s28 = int_to_ptr.vmem [resolvable:$false] %s763_s28 }
  0x36   : > { %s765_s29 = scalar_lea.vmem %s764_s28, 512  ;;  %p766_p1 = scmp.lt.s32.totalorder %s1005_s3, %s764_s28 }
  0x37   : > { %p761_p13 = pnand %p759_p11, %p745_p12  ;;  %p767_p7 = scmp.lt.s32.totalorder %s765_s29, %s758_s23 }
  0x39   : > { %p762_p4 = pneg %p761_p13  ;;  %p768_p10 = por %p767_p7, %p766_p1 }
  0x3b   : > { %p769_p6 = pnand %p768_p10, %p762_p4 }
  0x3d   : > { %772 = shalt.err (!%p769_p6)
}
  0x3e   : > { %601 = dma.hbm_to_vmem [thread:$0]  (!%p1009_p2), %s1003_s30, 256, %s1005_s3, %s134_s25  }
  0x3f   : > { %156 = sbr.rel (%p934_p8) target bundleno = 579 (0x243), region = 28  ;;  %p1200_p9 = scmp.ne.s32.totalorder (!%p934_p8), %s1190_s17, 0 }
  0x46   : > { %826 = dma.done.wait (%p1200_p9), [#allocation6], 16  }
  0x47   : > { %828 = vsyncadd (%p1200_p9), [#allocation6], 4294967280  ;;  %s1045_s18 = sand.u32 1, %s843_s10   ;;  %p1201_p1 = scmp.ne.s32.totalorder %s1192_s19, 0 }
  0x48   : > { %s563_s5 = sshll.u32 %s1045_s18, 4  ;;  %s163_s4 = scalar_lea.sflag [#allocation4], %s1045_s18 }
  0x49   : > { %s166_s6 = scalar_lea.vmem [#allocation7], %s563_s5 }
  0x4a   : > { %830 = dma.done.wait (%p1201_p1), %s163_s4, 256  }
  0x4b   : > { %832 = vsyncadd (%p1201_p1), %s163_s4, 4294967040 }
  0x4c   : > { %171 = sfence }
  0x4d   : > { %v194_v0 = vld [vmem:[%s166_s6] sm:$0xff]  ;;  %v195_v1 = vld [vmem:[%s166_s6 + $0x8] sm:$0xff]  ;;  %s198_s21 = sld [smem:[#allocation3]]  ;;  %s566_s17 = sld [smem:[#allocation3 + $0x2]]  ;;  %vm219_vm0 = vcmask 7168   ;;  %vm233_vm1 = vcmask 15368  }
  0x4e   : > { %s565_s30 = sld [smem:[#allocation3 + $0x1]]  ;;  %s567_s3 = sld [smem:[#allocation3 + $0x3]]  ;;  %v1053_v2 = vmul.f32 250.0, %v194_v0  ;;  %v1055_v3 = vmul.f32 250.0, %v195_v1  ;;  %vm247_vm2 = vcmask 23568   ;;  %vm261_vm3 = vcmask 31768  }
  0x4f   : > { %s568_s25 = sld [smem:[#allocation3 + $0x4]]  ;;  %s1057_s7 = sld [smem:[#allocation3 + $0x5]]  ;;  %vm275_vm4 = vcmask 39968   ;;  %vm289_vm5 = vcmask 48168   ;;  %vm303_vm6 = vcmask 56368   ;;  %vm317_vm7 = vcmask 64568  }
  0x50   : > { %s1059_s16 = sld [smem:[#allocation3 + $0x6]]  ;;  %s1065_s19 = sld [smem:[#allocation3 + $0x7]]  ;;  %vm331_vm8 = vcmask 72768   ;;  %vm345_vm9 = vcmask 80968   ;;  %vm359_vm10 = vcmask 89168   ;;  %vm373_vm11 = vcmask 97368  }
  0x51   : > { %s1069_s8 = sld [smem:[#allocation3 + $0x8]]  ;;  %s1074_s24 = sld [smem:[#allocation3 + $0x9]]  ;;  %vm387_vm12 = vcmask 105568   ;;  %vm401_vm13 = vcmask 113768   ;;  %vm415_vm14 = vcmask 121968   ;;  %vm429_vm15 = vcmask 130168  }
  0x52   : > { %s1079_s23 = sld [smem:[#allocation3 + $0xa]]  ;;  %s1084_s27 = sld [smem:[#allocation3 + $0xb]] }
  0x53   : > { %v199_v4 = vstv %s198_s21  ;;  %v222_v5 = vstv %s566_s17  ;;  %s1089_s28 = sld [smem:[#allocation3 + $0xc]]  ;;  %s1094_s29 = sld [smem:[#allocation3 + $0xd]] }
  0x54   : > { %v200_v6 = vsub.f32 %v1053_v2, %v199_v4  ;;  %v201_v7 = vsub.f32 %v1055_v3, %v199_v4  ;;  %v223_v8 = vsub.f32 %v1053_v2, %v222_v5  ;;  %v224_v9 = vsub.f32 %v1055_v3, %v222_v5  ;;  %s1099_s5 = sld [smem:[#allocation3 + $0xe]]  ;;  %s1104_s4 = sld [smem:[#allocation3 + $0xf]] }
  0x55   : > { %v208_v10 = vstv %s565_s30  ;;  %v236_v11 = vstv %s567_s3  ;;  %v250_v14 = vstv %s568_s25  ;;  %v264_v17 = vstv %s1057_s7  ;;  %s1109_s6 = sld [smem:[#allocation3 + $0x10]]  ;;  %s564_s21 = sshll.u32 %s1045_s18, 3 }
  0x56   : > { %660 = vtanh.f32 %v200_v6  ;;  %v209_v12 = vsub.f32 %v1053_v2, %v208_v10  ;;  %v210_v13 = vsub.f32 %v1055_v3, %v208_v10  ;;  %v237_v15 = vsub.f32 %v1053_v2, %v236_v11  ;;  %s582_s17 = sshll.u32 %s851_s12, 7  ;;  %s187_s30 = scalar_lea.vmem [#allocation8], %s564_s21 }
  0x57   : > { %662 = vtanh.f32 %v201_v7  ;;  %v238_v16 = vsub.f32 %v1055_v3, %v236_v11  ;;  %v251_v18 = vsub.f32 %v1053_v2, %v250_v14  ;;  %v252_v19 = vsub.f32 %v1055_v3, %v250_v14  ;;  %s460_s3 = sshll.u32 %s187_s30, 4  ;;  %p1202_p8 = scmp.ne.s32.totalorder %s1198_s15, 0  ;;  %s1136_s3 = int_to_ptr.vmem [resolvable:$true] %s460_s3 }
  0x58   : > { %664 = vtanh.f32 %v223_v8  ;;  %v278_v20 = vstv %s1059_s16  ;;  %v265_v21 = vsub.f32 %v1053_v2, %v264_v17  ;;  %v266_v22 = vsub.f32 %v1055_v3, %v264_v17  ;;  %s1134_s16 = scalar_lea.hbm %s1185_s2, %s582_s17  ;;  %s864_s12 = smov [#allocation8]  }
  0x59   : > { %666 = vtanh.f32 %v224_v9  ;;  %v292_v23 = vstv %s1065_s19  ;;  %v279_v24 = vsub.f32 %v1053_v2, %v278_v20  ;;  %v280_v25 = vsub.f32 %v1055_v3, %v278_v20  ;;  %s447_s19 = scalar_lea.sflag [#allocation5], %s1045_s18 }
  0x5a   : > { %668 = vtanh.f32 %v209_v12  ;;  %v306_v26 = vstv %s1069_s8  ;;  %v293_v28 = vsub.f32 %v1053_v2, %v292_v23  ;;  %v294_v30 = vsub.f32 %v1055_v3, %v292_v23  ;;  %s773_s8 = scalar_lea.vmem %s1136_s3, 128 }
  0x5b   : > { %670 = vtanh.f32 %v210_v13  ;;  %v320_v31 = vstv %s1074_s24  ;;  %v307_v34 = vsub.f32 %v1053_v2, %v306_v26  ;;  %v308_v36 = vsub.f32 %v1055_v3, %v306_v26  ;;  %p774_p4 = scmp.ne.s32.totalorder %s1136_s3, %s773_s8  ;;  %s777_s24 = sshll.u32 %s864_s12, 4  ;;  %s778_s24 = int_to_ptr.vmem [resolvable:$false] %s777_s24 }
  0x5c   : > { %672 = vtanh.f32 %v237_v15  ;;  %v334_v37 = vstv %s1079_s23  ;;  %v321_v40 = vsub.f32 %v1053_v2, %v320_v31  ;;  %v322_v42 = vsub.f32 %v1055_v3, %v320_v31  ;;  %s779_s23 = scalar_lea.vmem %s778_s24, 256  ;;  %p780_p0 = scmp.lt.s32.totalorder %s1136_s3, %s778_s24 }
  0x5d   : > { %674 = vtanh.f32 %v238_v16  ;;  %v348_v43 = vstv %s1084_s27  ;;  %v335_v46 = vsub.f32 %v1053_v2, %v334_v37  ;;  %v336_v48 = vsub.f32 %v1055_v3, %v334_v37  ;;  %p775_p2 = pnand %p774_p4, %p1202_p8  ;;  %p781_p3 = scmp.lt.s32.totalorder %s779_s23, %s773_s8 }
  0x5e   : > { %676 = vtanh.f32 %v251_v18  ;;  %v362_v49 = vstv %s1089_s28  ;;  %v349_v52 = vsub.f32 %v1053_v2, %v348_v43  ;;  %v350_v54 = vsub.f32 %v1055_v3, %v348_v43 }
  0x5f   : > { %678 = vtanh.f32 %v252_v19  ;;  %v376_v55 = vstv %s1094_s29  ;;  %v363_v58 = vsub.f32 %v1053_v2, %v362_v49  ;;  %v364_v60 = vsub.f32 %v1055_v3, %v362_v49  ;;  %p776_p12 = pneg %p775_p2  ;;  %p782_p5 = por %p781_p3, %p780_p0 }
  0x60   : > { %v661_v27 = vpop.eup %660  ;;  %680 = vtanh.f32 %v265_v21  ;;  %v390_v61 = vstv %s1099_s5  ;;  %v377_v0 = vsub.f32 %v1053_v2, %v376_v55  ;;  %v378_v4 = vsub.f32 %v1055_v3, %v376_v55 }
  0x61   : > { %v663_v29 = vpop.eup %662  ;;  %682 = vtanh.f32 %v266_v22  ;;  %v404_v5 = vstv %s1104_s4  ;;  %v391_v8 = vsub.f32 %v1053_v2, %v390_v61  ;;  %v392_v10 = vsub.f32 %v1055_v3, %v390_v61  ;;  %p783_p11 = pnand %p782_p5, %p776_p12 }
  0x62   : > { %v665_v32 = vpop.eup %664  ;;  %v204_v33 = vadd.f32 %v663_v29, %v661_v27  ;;  %684 = vtanh.f32 %v279_v24  ;;  %v418_v11 = vstv %s1109_s6  ;;  %v405_v14 = vsub.f32 %v1053_v2, %v404_v5 }
  0x63   : > { %v667_v35 = vpop.eup %666  ;;  %686 = vtanh.f32 %v280_v25  ;;  %v406_v16 = vsub.f32 %v1055_v3, %v404_v5  ;;  %v419_v19 = vsub.f32 %v1053_v2, %v418_v11  ;;  %v420_v21 = vsub.f32 %v1055_v3, %v418_v11 }
  0x64   : > { %v669_v38 = vpop.eup %668  ;;  %205 = vadd.xlane.f32.xlu0 %v204_v33  ;;  %v227_v39 = vadd.f32 %v667_v35, %v665_v32  ;;  %688 = vtanh.f32 %v293_v28  ;;  %v863_v2 = vmov 0.0  }
  0x65   : > { %v671_v41 = vpop.eup %670  ;;  %690 = vtanh.f32 %v294_v30  ;;  %193 = vst [vmem:[#allocation2] sm:$0xff] %v863_v2 }
  0x66   : > { %v673_v44 = vpop.eup %672  ;;  %228 = vadd.xlane.f32.xlu1 %v227_v39  ;;  %v213_v45 = vadd.f32 %v671_v41, %v669_v38  ;;  %692 = vtanh.f32 %v307_v34 }
  0x67   : > { %v675_v47 = vpop.eup %674  ;;  %694 = vtanh.f32 %v308_v36 }
  0x68   : > { %v677_v50 = vpop.eup %676  ;;  %214 = vadd.xlane.f32.xlu0 %v213_v45  ;;  %v241_v51 = vadd.f32 %v675_v47, %v673_v44  ;;  %696 = vtanh.f32 %v321_v40 }
  0x69   : > { %v679_v53 = vpop.eup %678  ;;  %698 = vtanh.f32 %v322_v42 }
  0x6a   : > { %v681_v56 = vpop.eup %680  ;;  %242 = vadd.xlane.f32.xlu1 %v241_v51  ;;  %v255_v57 = vadd.f32 %v679_v53, %v677_v50  ;;  %700 = vtanh.f32 %v335_v46 }
  0x6b   : > { %v683_v59 = vpop.eup %682  ;;  %702 = vtanh.f32 %v336_v48 }
  0x6c   : > { %v685_v62 = vpop.eup %684  ;;  %256 = vadd.xlane.f32.xlu0 %v255_v57  ;;  %v269_v63 = vadd.f32 %v683_v59, %v681_v56  ;;  %704 = vtanh.f32 %v349_v52 }
  0x6d   : > { %v687_v1 = vpop.eup %686  ;;  %706 = vtanh.f32 %v350_v54 }
  0x6e   : > { %v689_v6 = vpop.eup %688  ;;  %270 = vadd.xlane.f32.xlu1 %v269_v63  ;;  %v283_v7 = vadd.f32 %v687_v1, %v685_v62  ;;  %708 = vtanh.f32 %v363_v58 }
  0x6f   : > { %v691_v9 = vpop.eup %690  ;;  %710 = vtanh.f32 %v364_v60 }
  0x70   : > { %v693_v12 = vpop.eup %692  ;;  %284 = vadd.xlane.f32.xlu0 %v283_v7  ;;  %v297_v13 = vadd.f32 %v691_v9, %v689_v6  ;;  %712 = vtanh.f32 %v377_v0 }
  0x71   : > { %v695_v15 = vpop.eup %694  ;;  %714 = vtanh.f32 %v378_v4 }
  0x72   : > { %v697_v17 = vpop.eup %696  ;;  %298 = vadd.xlane.f32.xlu1 %v297_v13  ;;  %v311_v18 = vadd.f32 %v695_v15, %v693_v12  ;;  %716 = vtanh.f32 %v391_v8 }
  0x73   : > { %v699_v20 = vpop.eup %698  ;;  %718 = vtanh.f32 %v392_v10 }
  0x74   : > { %v701_v22 = vpop.eup %700  ;;  %312 = vadd.xlane.f32.xlu0 %v311_v18  ;;  %v325_v23 = vadd.f32 %v699_v20, %v697_v17  ;;  %720 = vtanh.f32 %v405_v14 }
  0x75   : > { %v703_v24 = vpop.eup %702  ;;  %722 = vtanh.f32 %v406_v16 }
  0x76   : > { %v705_v25 = vpop.eup %704  ;;  %326 = vadd.xlane.f32.xlu1 %v325_v23  ;;  %v339_v26 = vadd.f32 %v703_v24, %v701_v22  ;;  %724 = vtanh.f32 %v419_v19 }
  0x77   : > { %v707_v27 = vpop.eup %706  ;;  %726 = vtanh.f32 %v420_v21 }
  0x78   : > { %v709_v28 = vpop.eup %708  ;;  %340 = vadd.xlane.f32.xlu0 %v339_v26  ;;  %v353_v29 = vadd.f32 %v707_v27, %v705_v25 }
  0x79   : > { %v711_v30 = vpop.eup %710 }
  0x7a   : > { %v713_v3 = vpop.eup %712  ;;  %354 = vadd.xlane.f32.xlu1 %v353_v29  ;;  %v367_v31 = vadd.f32 %v711_v30, %v709_v28 }
  0x7b   : > { %v715_v32 = vpop.eup %714 }
  0x7c   : > { %v717_v33 = vpop.eup %716  ;;  %368 = vadd.xlane.f32.xlu0 %v367_v31  ;;  %v381_v34 = vadd.f32 %v715_v32, %v713_v3 }
  0x7d   : > { %v719_v35 = vpop.eup %718 }
  0x7e   : > { %v721_v36 = vpop.eup %720  ;;  %382 = vadd.xlane.f32.xlu1 %v381_v34  ;;  %v395_v37 = vadd.f32 %v719_v35, %v717_v33 }
  0x7f   : > { %v723_v38 = vpop.eup %722 }
  0x80   : > { %v725_v39 = vpop.eup %724  ;;  %396 = vadd.xlane.f32.xlu0 %v395_v37  ;;  %v409_v40 = vadd.f32 %v723_v38, %v721_v36 }
  0x81   : > { %v727_v41 = vpop.eup %726 }
  0x82   : > { %410 = vadd.xlane.f32.xlu1 %v409_v40  ;;  %v423_v42 = vadd.f32 %v727_v41, %v725_v39  ;;  %v434_v41 = vlaneseq }
  0x84   : > { %424 = vadd.xlane.f32.xlu0 %v423_v42 }
  0xf1   : > { %v206_v43 = vpop.xlane.xlu0 %205 }
  0xf3   : > { %v229_v46 = vpop.xlane.xlu1 %228 }
  0xf5   : > { %v215_v44 = vpop.xlane.xlu0 %214 }
  0xf6   : > { %v217_v45 = vsub.f32 %v206_v43, %v215_v44  ;;  %v231_v47 = vsub.f32 %v215_v44, %v229_v46  ;;  %v435_v44 = vand.u32 127, %v434_v41 }
  0xf7   : > { %v243_v50 = vpop.xlane.xlu1 %242 }
  0xf8   : > { %220 = vst.msk [vmem:[#allocation2] sm:$0xff] %vm219_vm0, %v217_v45  ;;  %v245_v51 = vsub.f32 %v229_v46, %v243_v50  ;;  %vm436_vm0 = vcmp.lt.s32.totalorder %v435_v44, 16 }
  0xf9   : > { %v257_v54 = vpop.xlane.xlu0 %256  ;;  %v437_v45 = vsel %vm436_vm0, 1e-06, %v863_v2 }
  0xfa   : > { %v259_v55 = vsub.f32 %v243_v50, %v257_v54 }
  0xfb   : > { %v271_v58 = vpop.xlane.xlu1 %270 }
  0xfc   : > { %v273_v59 = vsub.f32 %v257_v54, %v271_v58 }
  0xfd   : > { %v285_v62 = vpop.xlane.xlu0 %284 }
  0xfe   : > { %v287_v63 = vsub.f32 %v271_v58, %v285_v62 }
  0xff   : > { %v230_v48 = vld [vmem:[#allocation2] sm:$0xff]  ;;  %v299_v4 = vpop.xlane.xlu1 %298 }
 0x100   : > { %v232_v49 = vadd.f32 %v231_v47, %v230_v48  ;;  %v301_v5 = vsub.f32 %v285_v62, %v299_v4 }
 0x101   : > { %v313_v8 = vpop.xlane.xlu0 %312 }
 0x102   : > { %234 = vst.msk [vmem:[#allocation2] sm:$0xff] %vm233_vm1, %v232_v49  ;;  %v315_v9 = vsub.f32 %v299_v4, %v313_v8 }
 0x103   : > { %v327_v12 = vpop.xlane.xlu1 %326 }
 0x104   : > { %v329_v13 = vsub.f32 %v313_v8, %v327_v12 }
 0x105   : > { %v341_v16 = vpop.xlane.xlu0 %340 }
 0x106   : > { %v343_v17 = vsub.f32 %v327_v12, %v341_v16 }
 0x107   : > { %v355_v20 = vpop.xlane.xlu1 %354 }
 0x108   : > { %v357_v21 = vsub.f32 %v341_v16, %v355_v20 }
 0x109   : > { %v244_v52 = vld [vmem:[#allocation2] sm:$0xff]  ;;  %v369_v24 = vpop.xlane.xlu0 %368 }
 0x10a   : > { %v246_v53 = vadd.f32 %v245_v51, %v244_v52  ;;  %v371_v25 = vsub.f32 %v355_v20, %v369_v24 }
 0x10b   : > { %v383_v28 = vpop.xlane.xlu1 %382 }
 0x10c   : > { %248 = vst.msk [vmem:[#allocation2] sm:$0xff] %vm247_vm2, %v246_v53  ;;  %v385_v29 = vsub.f32 %v369_v24, %v383_v28 }
 0x10d   : > { %v397_v31 = vpop.xlane.xlu0 %396 }
 0x10e   : > { %v399_v32 = vsub.f32 %v383_v28, %v397_v31 }
 0x10f   : > { %v411_v35 = vpop.xlane.xlu1 %410 }
 0x110   : > { %v413_v36 = vsub.f32 %v397_v31, %v411_v35 }
 0x111   : > { %v425_v39 = vpop.xlane.xlu0 %424 }
 0x112   : > { %v427_v40 = vsub.f32 %v411_v35, %v425_v39 }
 0x113   : > { %v258_v56 = vld [vmem:[#allocation2] sm:$0xff] }
 0x114   : > { %v260_v57 = vadd.f32 %v259_v55, %v258_v56 }
 0x116   : > { %262 = vst.msk [vmem:[#allocation2] sm:$0xff] %vm261_vm3, %v260_v57 }
 0x11d   : > { %v272_v60 = vld [vmem:[#allocation2] sm:$0xff] }
 0x11e   : > { %v274_v61 = vadd.f32 %v273_v59, %v272_v60 }
 0x120   : > { %276 = vst.msk [vmem:[#allocation2] sm:$0xff] %vm275_vm4, %v274_v61 }
 0x127   : > { %v286_v0 = vld [vmem:[#allocation2] sm:$0xff] }
 0x128   : > { %v288_v1 = vadd.f32 %v287_v63, %v286_v0 }
 0x12a   : > { %290 = vst.msk [vmem:[#allocation2] sm:$0xff] %vm289_vm5, %v288_v1 }
 0x131   : > { %v300_v6 = vld [vmem:[#allocation2] sm:$0xff] }
 0x132   : > { %v302_v7 = vadd.f32 %v301_v5, %v300_v6 }
 0x134   : > { %304 = vst.msk [vmem:[#allocation2] sm:$0xff] %vm303_vm6, %v302_v7 }
 0x13b   : > { %v314_v10 = vld [vmem:[#allocation2] sm:$0xff] }
 0x13c   : > { %v316_v11 = vadd.f32 %v315_v9, %v314_v10 }
 0x13e   : > { %318 = vst.msk [vmem:[#allocation2] sm:$0xff] %vm317_vm7, %v316_v11 }
 0x145   : > { %v328_v14 = vld [vmem:[#allocation2] sm:$0xff] }
 0x146   : > { %v330_v15 = vadd.f32 %v329_v13, %v328_v14 }
 0x148   : > { %332 = vst.msk [vmem:[#allocation2] sm:$0xff] %vm331_vm8, %v330_v15 }
 0x14f   : > { %v342_v18 = vld [vmem:[#allocation2] sm:$0xff] }
 0x150   : > { %v344_v19 = vadd.f32 %v343_v17, %v342_v18 }
 0x152   : > { %346 = vst.msk [vmem:[#allocation2] sm:$0xff] %vm345_vm9, %v344_v19 }
 0x159   : > { %v356_v22 = vld [vmem:[#allocation2] sm:$0xff] }
 0x15a   : > { %v358_v23 = vadd.f32 %v357_v21, %v356_v22 }
 0x15c   : > { %360 = vst.msk [vmem:[#allocation2] sm:$0xff] %vm359_vm10, %v358_v23 }
 0x163   : > { %v370_v26 = vld [vmem:[#allocation2] sm:$0xff] }
 0x164   : > { %v372_v27 = vadd.f32 %v371_v25, %v370_v26 }
 0x166   : > { %374 = vst.msk [vmem:[#allocation2] sm:$0xff] %vm373_vm11, %v372_v27 }
 0x16d   : > { %v384_v30 = vld [vmem:[#allocation2] sm:$0xff] }
 0x16e   : > { %v386_v3 = vadd.f32 %v385_v29, %v384_v30 }
 0x170   : > { %388 = vst.msk [vmem:[#allocation2] sm:$0xff] %vm387_vm12, %v386_v3 }
 0x177   : > { %v398_v33 = vld [vmem:[#allocation2] sm:$0xff] }
 0x178   : > { %v400_v34 = vadd.f32 %v399_v32, %v398_v33 }
 0x17a   : > { %402 = vst.msk [vmem:[#allocation2] sm:$0xff] %vm401_vm13, %v400_v34 }
 0x181   : > { %v412_v37 = vld [vmem:[#allocation2] sm:$0xff] }
 0x182   : > { %v414_v38 = vadd.f32 %v413_v36, %v412_v37 }
 0x184   : > { %416 = vst.msk [vmem:[#allocation2] sm:$0xff] %vm415_vm14, %v414_v38 }
 0x18b   : > { %v426_v42 = vld [vmem:[#allocation2] sm:$0xff] }
 0x18c   : > { %v428_v43 = vadd.f32 %v427_v40, %v426_v42 }
 0x18e   : > { %430 = vst.msk [vmem:[#allocation2] sm:$0xff] %vm429_vm15, %v428_v43 }
 0x195   : > { %v438_v46 = vld [vmem:[#allocation2] sm:$0xff] }
 0x196   : > { %v439_v47 = vmul.f32 0.5, %v438_v46 }
 0x198   : > { %v440_v48 = vadd.f32 %v439_v47, %v437_v45 }
 0x19a   : > { %441 = vadd.xlane.f32.xlu1 %v440_v48 }
 0x227   : > { %v442_v49 = vpop.xlane.xlu1 %441 }
 0x228   : > { %728 = vrcp.f32 %v442_v49 }
 0x232   : > { %v729_v50 = vpop.eup %728 }
 0x233   : > { %v444_v51 = vmul.f32 %v729_v50, %v440_v48 }
 0x235   : > { %445 = vst [vmem:[%s187_s30] sm:$0xff] %v444_v51 }
 0x236   : > { %786 = shalt.err (!%p783_p11)
}
 0x237   : > { %s787_s18 = scalar_lea.hbm %s1134_s16, 128  ;;  %s791_s29 = scalar_lea.hbm %s1185_s2, 256 }
 0x238   : > { %p788_p13 = scmp.ne.s32.totalorder %s1134_s16, %s787_s18  ;;  %p792_p6 = scmp.lt.u32.totalorder %s1134_s16, %s1185_s2 }
 0x239   : > { %p793_p9 = scmp.lt.u32.totalorder %s791_s29, %s787_s18  ;;  %p795_p4 = scmp.lt.u32.totalorder %s787_s18, %s1134_s16 }
 0x23a   : > { %p789_p7 = pnand %p788_p13, %p1202_p8 }
 0x23b   : > { %p794_p1 = por %p793_p9, %p792_p6 }
 0x23c   : > { %p790_p10 = pneg %p789_p7 }
 0x23d   : > { %p796_p2 = por %p795_p4, %p794_p1 }
 0x23f   : > { %p797_p12 = pnand %p796_p2, %p790_p10 }
 0x241   : > { %800 = shalt.err (!%p797_p12)
}
 0x242   : > { %592 = dma.vmem_to_hbm [thread:$0]  (%p1202_p8), %s1136_s3, 128, %s1134_s16, %s447_s19  }
 0x243 PF: > { %s472_s6 = sand.u32 1, %s839_s9   ;;  %p1203_p0 = scmp.ne.s32.totalorder %s1193_s20, 0 }
 0x244   : > { %p1204_p3 = scmp.ge.s32.totalorder %s859_s14, 2  ;;  %s473_s21 = scalar_lea.sflag [#allocation5], %s472_s6 }
 0x246   : > { %p603_p5 = pnand %p1204_p3, %p1203_p0 }
 0x248   : > { %834 = dma.done.wait (!%p603_p5), %s473_s21, 128  }
 0x249   : > { %836 = vsyncadd (!%p603_p5), %s473_s21, 4294967168  ;;  %s19_s14 = sadd.s32 1, %s859_s14   ;;  %s1205_s9 = smov %s843_s10 }
 0x24a   : > { %p16_p11 = scmp.ge.s32.totalorder %s19_s14, 4   ;;  %s1206_s10 = smov %s847_s11 }
 0x24b   : > { %s1207_s11 = smov %s997_s26  ;;  %s1208_s12 = smov %s855_s13 }
 0x24c   : > { %s1209_s13 = smov %s1211_s22  ;;  %18 = sbr.rel (!%p16_p11) target bundleno = 7 (0x7), region = 86 }
 0x253   :  { %478 = vsyncpa [#allocation4], 1 }
 0x254   :  { %480 = vsyncpa [#allocation4 + $0x1], 1 }
 0x255   :  { %481 = vsyncpa [#allocation5], 1 }
 0x256   :  { %483 = vsyncpa [#allocation5 + $0x1], 1 }
 0x257   :  { %484 = vsyncpa [#allocation6], 1 }
 0x258   :  { %486 = vsyncpa [#allocation6 + $0x1], 1 }

</bundles_post_ra>
